<compile_context>
chip_gen: v6e
topology: v6e:2x2x1
jax: 0.10.0
libtpu: 0.0.40
codegen_flags: <defaults>
</compile_context>

<pallas_src>
import math
import functools

import jax
import jax.numpy as jnp
from jax.experimental import pallas as pl
from jax.experimental.pallas import tpu as pltpu


def _attn_kernel(x_ref, w_qkv_ref, b_qkv_ref, o_ref, *, batch, seq, head_size):
    B, S, Hd = batch, seq, head_size
    H = x_ref.shape[-1]

    # ---- fused QKV projection: one (B*S, H) @ (H, 3*Hd) MXU matmul ----
    x2d = x_ref[...].reshape(B * S, H)
    qkv = (jnp.dot(x2d, w_qkv_ref[...], preferred_element_type=jnp.float32)
           + b_qkv_ref[...])                                   # (B*S, 3*Hd)

    inv_scale = 1.0 / math.sqrt(Hd)
    q = (qkv[:, 0 * Hd:1 * Hd] * inv_scale).reshape(B, S, Hd)  # scale folded into q
    k = qkv[:, 1 * Hd:2 * Hd].reshape(B, S, Hd)
    v = qkv[:, 2 * Hd:3 * Hd].reshape(B, S, Hd)

    # ---- scores = (q / sqrt(Hd)) @ k^T, batched, no explicit transpose ----
    scores = jax.lax.dot_general(
        q, k,
        dimension_numbers=(((2,), (2,)), ((0,), (0,))),
        preferred_element_type=jnp.float32)                    # (B, S, S)

    # Causal (lower-triangular) mask; -inf matches PyTorch's masked_fill.
    row = jax.lax.broadcasted_iota(jnp.int32, (S, S), 0)
    col = jax.lax.broadcasted_iota(jnp.int32, (S, S), 1)
    scores = jnp.where((col <= row)[None], scores, -jnp.inf)

    # ---- row-wise softmax (exp on EUP; reciprocal on EUP via approx) ----
    m = jnp.max(scores, axis=-1, keepdims=True)
    e = jnp.exp(scores - m)
    denom = jnp.sum(e, axis=-1, keepdims=True)
    p = e * pl.reciprocal(denom, approx=True)

    # ---- out = p @ v, batched ----
    out = jax.lax.dot_general(
        p, v,
        dimension_numbers=(((2,), (1,)), ((0,), (0,))),
        preferred_element_type=jnp.float32)                    # (B, S, Hd)

    o_ref[...] = out.astype(o_ref.dtype)


def single_head_attention(x, wk, bk, wq, bq, wv, bv, *, head_size):
    """x: (B, S, H) f32; W*: (H, head_size); b*: (1, head_size) -> (B, S, head_size)."""
    B, S, H = x.shape
    Hd = head_size

    # Fuse the three projections into one weight so the kernel does a single
    # MXU matmul (column order: q | k | v).
    w_qkv = jnp.concatenate([wq, wk, wv], axis=1)   # (H, 3*Hd)
    b_qkv = jnp.concatenate([bq, bk, bv], axis=1)   # (1, 3*Hd)

    kernel = functools.partial(_attn_kernel, batch=B, seq=S, head_size=Hd)

    return pl.pallas_call(
        kernel,
        out_shape=jax.ShapeDtypeStruct((B, S, Hd), x.dtype),
        # Single invocation (no grid): whole arrays resident in VMEM.
        in_specs=[
            pl.BlockSpec(memory_space=pltpu.MemorySpace.VMEM),   # x
            pl.BlockSpec(memory_space=pltpu.MemorySpace.VMEM),   # fused W_qkv
            pl.BlockSpec(memory_space=pltpu.MemorySpace.VMEM),   # fused b_qkv
        ],
        out_specs=pl.BlockSpec(memory_space=pltpu.MemorySpace.VMEM),
    )(x, w_qkv, b_qkv)


def _reference(x, wk, bk, wq, bq, wv, bv, head_size):
    k = x @ wk + bk
    q = x @ wq + bq
    v = x @ wv + bv
    scores = jnp.einsum("bqd,bkd->bqk", q, k)
    S = x.shape[1]
    mask = jnp.tril(jnp.ones((S, S), dtype=bool))
    scores = jnp.where(mask, scores, -jnp.inf) / math.sqrt(head_size)
    p = jax.nn.softmax(scores, axis=-1)
    return jnp.einsum("bqk,bkd->bqd", p, v)


if __name__ == "__main__":
    # config: hidden_dim=32, head_size=16, block_size >= seq_len=8, dropout=0.0
    B, S, H, Hd = 2, 8, 32, 16

    key = jax.random.PRNGKey(0)
    kx, kk, kbk, kq, kbq, kv_, kbv = jax.random.split(key, 7)

    x = jax.random.normal(kx, (B, S, H), dtype=jnp.float32)

    # deterministic "Linear"-like init (uniform in +-1/sqrt(H))
    bound = 1.0 / math.sqrt(H)
    wk = jax.random.uniform(kk, (H, Hd), jnp.float32, -bound, bound)
    bk = jax.random.uniform(kbk, (1, Hd), jnp.float32, -bound, bound)
    wq = jax.random.uniform(kq, (H, Hd), jnp.float32, -bound, bound)
    bq = jax.random.uniform(kbq, (1, Hd), jnp.float32, -bound, bound)
    wv = jax.random.uniform(kv_, (H, Hd), jnp.float32, -bound, bound)
    bv = jax.random.uniform(kbv, (1, Hd), jnp.float32, -bound, bound)

    out = single_head_attention(x, wk, bk, wq, bq, wv, bv, head_size=Hd)
    out = jax.block_until_ready(out)

    ref = _reference(x, wk, bk, wq, bq, wv, bv, Hd)
    assert out.shape == (B, S, Hd)
    # The approx (EUP) reciprocal in the softmax denominator is ~1e-4 relative
    # accuracy, so compare against the exact reference with a small tolerance.
    assert jnp.allclose(out, ref, atol=5e-3, rtol=5e-3), "mismatch vs reference"

    print("KERNEL_OK")
</pallas_src>

<mosaic_0001>
module attributes {stable_mosaic.version = 11 : i64} {
  func.func @_attn_kernel(%arg0: memref<2x8x32xf32, #tpu.memory_space<vmem>>, %arg1: memref<32x48xf32, #tpu.memory_space<vmem>>, %arg2: memref<1x48xf32, #tpu.memory_space<vmem>>, %arg3: memref<2x8x16xf32, #tpu.memory_space<vmem>>) attributes {dimension_semantics = [], scalar_prefetch = 0 : i64, scratch_operands = 0 : i64, tpu.core_type = #tpu.core_type<tc>} {
    %c0 = arith.constant 0 : index
    %c0_0 = arith.constant 0 : index
    %c0_1 = arith.constant 0 : index
    %0 = vector.load %arg0[%c0, %c0_0, %c0_1] : memref<2x8x32xf32, #tpu.memory_space<vmem>>, vector<2x8x32xf32>
    %1 = vector.shape_cast %0 : vector<2x8x32xf32> to vector<16x32xf32>
    %c0_2 = arith.constant 0 : index
    %c0_3 = arith.constant 0 : index
    %2 = vector.load %arg1[%c0_2, %c0_3] : memref<32x48xf32, #tpu.memory_space<vmem>>, vector<32x48xf32>
    %cst = arith.constant dense<0.000000e+00> : vector<16x48xf32>
    %3 = tpu.matmul %1, %2, %cst {dimension_numbers = #tpu.dot_dimension_numbers<[1], [0], [0], [1], [0, 0, 1, 1], [], []>} : vector<16x32xf32>, vector<32x48xf32>, vector<16x48xf32> -> vector<16x48xf32>
    %c0_4 = arith.constant 0 : index
    %c0_5 = arith.constant 0 : index
    %4 = vector.load %arg2[%c0_4, %c0_5] : memref<1x48xf32, #tpu.memory_space<vmem>>, vector<1x48xf32>
    %5 = vector.broadcast %4 : vector<1x48xf32> to vector<16x48xf32>
    %6 = arith.addf %3, %5 : vector<16x48xf32>
    %7 = vector.extract_strided_slice %6 {offsets = [0, 0], sizes = [16, 16], strides = [1, 1]} : vector<16x48xf32> to vector<16x16xf32>
    %cst_6 = arith.constant 2.500000e-01 : f32
    %8 = vector.broadcast %cst_6 : f32 to vector<16x16xf32>
    %9 = arith.mulf %7, %8 : vector<16x16xf32>
    %10 = vector.shape_cast %9 : vector<16x16xf32> to vector<2x8x16xf32>
    %11 = vector.extract_strided_slice %6 {offsets = [0, 16], sizes = [16, 16], strides = [1, 1]} : vector<16x48xf32> to vector<16x16xf32>
    %12 = vector.shape_cast %11 : vector<16x16xf32> to vector<2x8x16xf32>
    %13 = vector.extract_strided_slice %6 {offsets = [0, 32], sizes = [16, 16], strides = [1, 1]} : vector<16x48xf32> to vector<16x16xf32>
    %14 = vector.shape_cast %13 : vector<16x16xf32> to vector<2x8x16xf32>
    %cst_7 = arith.constant dense<0.000000e+00> : vector<2x8x8xf32>
    %15 = tpu.matmul %10, %12, %cst_7 {dimension_numbers = #tpu.dot_dimension_numbers<[2], [2], [1], [1], [0, 0, 0, 1, 1, 1], [0], [0]>} : vector<2x8x16xf32>, vector<2x8x16xf32>, vector<2x8x8xf32> -> vector<2x8x8xf32>
    %16 = tpu.iota {dimensions = array<i32: 0>} : vector<8x8xi32>
    %17 = tpu.iota {dimensions = array<i32: 1>} : vector<8x8xi32>
    %18 = arith.cmpi sle, %17, %16 : vector<8x8xi32>
    %19 = vector.shape_cast %18 : vector<8x8xi1> to vector<1x8x8xi1>
    %cst_8 = arith.constant 0xFF800000 : f32
    %20 = vector.shape_cast %19 : vector<1x8x8xi1> to vector<1x8x8xi1>
    %21 = vector.broadcast %20 : vector<1x8x8xi1> to vector<2x8x8xi1>
    %22 = vector.broadcast %cst_8 : f32 to vector<2x8x8xf32>
    %23 = arith.select %21, %15, %22 : vector<2x8x8xi1>, vector<2x8x8xf32>
    %cst_9 = arith.constant dense<0xFF800000> : vector<2x8xf32>
    %24 = vector.multi_reduction <maximumf>, %23, %cst_9 [2] : vector<2x8x8xf32> to vector<2x8xf32>
    %25 = vector.shape_cast %24 : vector<2x8xf32> to vector<2x8x1xf32>
    %26 = vector.broadcast %25 : vector<2x8x1xf32> to vector<2x8x8xf32>
    %27 = arith.subf %23, %26 : vector<2x8x8xf32>
    %28 = math.exp %27 : vector<2x8x8xf32>
    %cst_10 = arith.constant dense<0.000000e+00> : vector<2x8xf32>
    %29 = vector.multi_reduction <add>, %28, %cst_10 [2] : vector<2x8x8xf32> to vector<2x8xf32>
    %30 = vector.shape_cast %29 : vector<2x8xf32> to vector<2x8x1xf32>
    %31 = tpu.reciprocal %30 {approx = true} : vector<2x8x1xf32> -> vector<2x8x1xf32>
    %32 = vector.broadcast %31 : vector<2x8x1xf32> to vector<2x8x8xf32>
    %33 = arith.mulf %28, %32 : vector<2x8x8xf32>
    %cst_11 = arith.constant dense<0.000000e+00> : vector<2x8x16xf32>
    %34 = tpu.matmul %33, %14, %cst_11 {dimension_numbers = #tpu.dot_dimension_numbers<[2], [1], [1], [2], [0, 0, 0, 1, 1, 2], [0], [0]>} : vector<2x8x8xf32>, vector<2x8x16xf32>, vector<2x8x16xf32> -> vector<2x8x16xf32>
    %c0_12 = arith.constant 0 : index
    %c0_13 = arith.constant 0 : index
    %c0_14 = arith.constant 0 : index
    %35 = vector.load %arg3[%c0_12, %c0_13, %c0_14] : memref<2x8x16xf32, #tpu.memory_space<vmem>>, vector<2x8x16xf32>
    tpu.vector_store %arg3[%c0_12, %c0_13, %c0_14], %34 {strides = array<i32>} : memref<2x8x16xf32, #tpu.memory_space<vmem>>, vector<2x8x16xf32>,
    return
  }
}

</mosaic_0001>

<bundles_post_ra>
// kernel: tpu_custom_call.1
= control target key start
LH: loop header
LB: loop body
LE: loop exit
PB: predicated region body
PF: predicated region fallthrough
CT: control target
= control target key end

     0   :  { %8 = vsyncpa [#allocation3], 0  ;;  %s706_s0 = inlined_call_operand.hbm [shape: f32[2,8,32], index: 0, kind: input, shape index: {}]   ;;  %s707_s1 = inlined_call_operand.hbm [shape: f32[32,48], index: 1, kind: input, shape index: {}]   ;;  %s708_s2 = inlined_call_operand.vmem [shape: f32[1,48], index: 2, kind: input, shape index: {}]   ;;  %s709_s3 = inlined_call_operand.hbm [shape: f32[2,8,16], index: 3, kind: output, shape index: {}]  }
   0x1   :  { %9 = vsyncpa [#allocation6], 0 }
   0x2   :  { %10 = vsyncpa [#allocation4], 0  ;;  %s638_s12 = smov [#allocation2]  }
   0x3   :  { %s16_s13 = sshll.u32 %s638_s12, 4  ;;  %s17_s13 = int_to_ptr.vmem [resolvable:$true] %s16_s13 }
   0x4   :  { %s580_s14 = scalar_lea.vmem %s17_s13, 256  ;;  %p585_p1 = scmp.lt.s32.totalorder %s17_s13, %s17_s13 }
   0x5   :  { %p581_p0 = scmp.ne.s32.totalorder %s17_s13, %s580_s14  ;;  %p586_p2 = scmp.lt.s32.totalorder %s580_s14, %s580_s14 }
   0x7   :  { %p587_p3 = por %p586_p2, %p585_p1 }
   0x9   :  { %p588_p4 = pnand %p587_p3, %p581_p0 }
   0xb   :  { %591 = shalt.err (!%p588_p4)
}
   0xc   :  { %s639_s15 = smov 128   ;;  %s640_s16 = smov 8  }
   0xd   :  { %22 = dma.hbm_to_vmem [thread:$0]  %s706_s0, 256, %s17_s13, [#allocation3], %s639_s15, %s639_s15, %s640_s16  }
   0xe   :  { %s641_s19 = smov [#allocation5]  }
   0xf   :  { %s28_s20 = sshll.u32 %s641_s19, 4  ;;  %s29_s20 = int_to_ptr.vmem [resolvable:$true] %s28_s20 }
  0x10   :  { %s600_s21 = scalar_lea.vmem %s29_s20, 512  ;;  %p605_p6 = scmp.lt.s32.totalorder %s29_s20, %s29_s20 }
  0x11   :  { %p601_p5 = scmp.ne.s32.totalorder %s29_s20, %s600_s21  ;;  %p606_p7 = scmp.lt.s32.totalorder %s600_s21, %s600_s21 }
  0x13   :  { %p607_p8 = por %p606_p7, %p605_p6 }
  0x15   :  { %p608_p9 = pnand %p607_p8, %p601_p5 }
  0x17   :  { %611 = shalt.err (!%p608_p9)
}
  0x18   :  { %34 = dma.hbm_to_vmem [thread:$0]  %s707_s1, 512, %s29_s20, [#allocation6], %s639_s15, %s639_s15, %s640_s16  }
  0x19   :  { %632 = dma.done.wait [#allocation3], 256  }
  0x1a   :  { %633 = vsyncadd [#allocation3], 4294967040 }
  0x1b   :  { %634 = dma.done.wait [#allocation6], 512  }
  0x1c   :  { %635 = vsyncadd [#allocation6], 4294966784  ;;  %vm56_vm0 = vcmask 261120   ;;  %v48_v0 = vld [vmem:[#allocation5 + $0x18] sm:$0xff]  ;;  %v47_v1 = vld [vmem:[#allocation5 + $0x10] sm:$0xff]  ;;  %v642_v6 = vmov 0.0   ;;  %v297_v16 = vlaneseq }
  0x1d   :  { %524 = vmatprep.subr.mxu0 %v48_v0  ;;  %v43_v2 = vld [vmem:[#allocation2] sm:$0xff]  ;;  %v46_v3 = vld [vmem:[#allocation5 + $0x8] sm:$0xff]  ;;  %v45_v4 = vld [vmem:[#allocation5] sm:$0xff]  ;;  %535 = vmatprep.subr.mxu1 %v642_v6  ;;  %vm643_vm1 = vmmov 0   ;;  %s644_s24 = smov 112   ;;  %vm143_vm2 = vcmask 130048  }
  0x1e   :  { %525 = vmatpush3.msra.mxu0 %v48_v0  ;;  %532 = vmatprep.mubr.msk.f32.mxu0 %vm56_vm0, %v43_v2  ;;  %v44_v5 = vld [vmem:[#allocation2 + $0x8] sm:$0xff]  ;;  %v501_v8 = vld [vmem:[%s708_s2] ss:$0 sm:$0xff]  ;;  %v298_v17 = vshrl.u32 %v297_v16, 7  ;;  %v300_v18 = vand.u32 127, %v297_v16  ;;  %vm306_vm4 = vcmask 64512  }
  0x1f   :  { %526 = vmatprep.subr.mxu0 %v47_v1  ;;  %537 = vmatprep.mubr.msk.f32.mxu1 %vm643_vm1, %v642_v6  ;;  %s645_s2 = smov 96   ;;  %s646_s25 = smov [#allocation7]  }
  0x20   :  { %527 = vmatpush3.msra.mxu0 %v47_v1  ;;  %vm301_vm3 = vcmp.le.s32.totalorder %v300_v18, %v298_v17  ;;  %s488_s26 = sshll.u32 %s646_s25, 4  ;;  %s489_s26 = int_to_ptr.vmem [resolvable:$true] %s488_s26 }
  0x21   :  { %528 = vmatprep.subr.mxu0 %v46_v3  ;;  %s612_s27 = scalar_lea.vmem %s489_s26, 256  ;;  %p617_p11 = scmp.lt.s32.totalorder %s489_s26, %s489_s26 }
  0x22   :  { %529 = vmatpush3.msra.mxu0 %v46_v3  ;;  %p613_p10 = scmp.ne.s32.totalorder %s489_s26, %s612_s27  ;;  %p618_p12 = scmp.lt.s32.totalorder %s612_s27, %s612_s27 }
  0x23   :  { %530 = vmatprep.subr.mxu0 %v45_v4 }
  0x24   :  { %531 = vmatpush3.msra.mxu0 %v45_v4  ;;  %p619_p13 = por %p618_p12, %p617_p11 }
  0x25   :  { %533 = vmatmul.mubr.msk.f32.vlgmr.msra.gmra.mxu0 %vm56_vm0, %v44_v5  ;;  %545 = vmatprep.subr.mxu0 %v642_v6 }
  0x26   :  { %547 = vmatprep.mubr.msk.f32.mxu0 %vm643_vm1, %v642_v6  ;;  %p620_p0 = pnand %p619_p13, %p613_p10 }
  0xe5   :  { %v534_v7 = vpop.f32.mrf.mxu0 }
  0xe6   :  { %v135_v11 = vadd.f32 %v534_v7, %v501_v8 }
  0xe7   :  { %v129_v9 = vpop.f32.mrf.mxu0 }
  0xe8   :  { %v130_v10 = vadd.f32 %v501_v8, %v129_v9  ;;  %v139_v15 = vmul.f32 0.25, %v135_v11 }
  0xea   :  { %141 = vrot.lane.b32.xlu0 %v130_v10, %s644_s24  ;;  %v138_v13 = vmul.f32 0.25, %v130_v10 }
  0xee   :  { %220 = vrot.lane.b32.xlu0 %v135_v11, %s644_s24 }
 0x15c   :  { %v142_v12 = vpop.permute.xlu0 %141 }
 0x15d   :  { %536 = vmatpush3.xpose.msk.msra.mxu1 %vm143_vm2, %v142_v12 }
 0x15e   :  { %540 = vmatprep.subr.mxu1 %v642_v6 }
 0x160   :  { %v221_v14 = vpop.permute.xlu0 %220  ;;  %538 = vmatmul.mubr.msk.f32.vlgmr.msra.gmra.mxu1 %vm143_vm2, %v138_v13 }
 0x161   :  { %541 = vmatpush3.xpose.msk.msra.mxu1 %vm143_vm2, %v221_v14  ;;  %542 = vmatprep.mubr.msk.f32.mxu1 %vm643_vm1, %v642_v6 }
 0x162   :  { %550 = vmatprep.subr.mxu1 %v642_v6 }
 0x164   :  { %543 = vmatmul.mubr.msk.f32.vlgmr.msra.gmra.mxu1 %vm143_vm2, %v139_v15 }
 0x165   :  { %552 = vmatprep.mubr.msk.f32.mxu1 %vm643_vm1, %v642_v6 }
 0x220   :  { %v215_v19 = vpop.f32.mrf.mxu1 }
 0x221   :  { %v304_v20 = vsel %vm301_vm3, %v215_v19, -inf }
 0x222   :  { %v539_v21 = vpop.f32.mrf.mxu1  ;;  %v307_v22 = vsel %vm306_vm4, %v304_v20, -inf }
 0x223   :  { %308 = vmax.xlane.f32.xlu1 %v307_v22 }
 0x224   :  { %v293_v23 = vpop.f32.mrf.mxu1 }
 0x225   :  { %v305_v24 = vsel %vm301_vm3, %v293_v23, -inf }
 0x226   :  { %v544_v25 = vpop.f32.mrf.mxu1  ;;  %v310_v26 = vsel %vm306_vm4, %v305_v24, -inf }
 0x227   :  { %311 = vmax.xlane.f32.xlu1 %v310_v26 }
 0x238   :  { %329 = vrot.lane.b32.xlu1 %v130_v10, %s645_s2 }
 0x2ac   :  { %v309_v27 = vpop.xlane.xlu1 %308 }
 0x2ad   :  { %v313_v28 = vsub.f32 %v304_v20, %v309_v27 }
 0x2af   :  { %v315_v29 = vmul.f32 1.442695, %v313_v28 }
 0x2b0   :  { %v312_v30 = vpop.xlane.xlu1 %311 }
 0x2b1   :  { %564 = vpow2.f32 %v315_v29  ;;  %v314_v31 = vsub.f32 %v305_v24, %v312_v30 }
 0x2b3   :  { %v317_v32 = vmul.f32 1.442695, %v314_v31 }
 0x2b4   :  { %v330_v33 = vpop.permute.xlu1 %329 }
 0x2b5   :  { %566 = vpow2.f32 %v317_v32  ;;  %546 = vmatpush3.msra.mxu0 %v330_v33 }
 0x2be   :  { %v565_v34 = vpop.eup %564 }
 0x2bf   :  { %v319_v35 = vsel %vm306_vm4, %v565_v34, 0.0 }
 0x2c0   :  { %320 = vadd.xlane.f32.xlu0 %v319_v35 }
 0x2c2   :  { %v567_v36 = vpop.eup %566 }
 0x2c3   :  { %v322_v37 = vsel %vm306_vm4, %v567_v36, 0.0 }
 0x2c4   :  { %323 = vadd.xlane.f32.xlu1 %v322_v37 }
 0x2d5   :  { %405 = vrot.lane.b32.xlu1 %v135_v11, %s645_s2 }
 0x349   :  { %v321_v38 = vpop.xlane.xlu0 %320 }
 0x34a   :  { %568 = vrcp.f32 %v321_v38 }
 0x34d   :  { %v324_v39 = vpop.xlane.xlu1 %323 }
 0x34e   :  { %570 = vrcp.f32 %v324_v39 }
 0x351   :  { %v406_v40 = vpop.permute.xlu1 %405 }
 0x352   :  { %551 = vmatpush3.msra.mxu1 %v406_v40 }
 0x357   :  { %v569_v41 = vpop.eup %568 }
 0x358   :  { %v327_v42 = vmul.f32 %v569_v41, %v565_v34 }
 0x35a   :  { %548 = vmatmul.mubr.msk.f32.vlgmr.msra.gmra.mxu0 %vm306_vm4, %v327_v42 }
 0x35b   :  { %v571_v43 = vpop.eup %570 }
 0x35c   :  { %v328_v44 = vmul.f32 %v571_v43, %v567_v36 }
 0x35e   :  { %553 = vmatmul.mubr.msk.f32.vlgmr.msra.gmra.mxu1 %vm306_vm4, %v328_v44 }
 0x41a   :  { %v401_v45 = vpop.f32.mrf.mxu0 }
 0x41b   :  { %481 = vst.msk [vmem:[#allocation7] sm:$0xff] %vm143_vm2, %v401_v45 }
 0x41c   :  { %v549_v46 = vpop.f32.mrf.mxu0 }
 0x41e   :  { %v477_v47 = vpop.f32.mrf.mxu1 }
 0x41f   :  { %482 = vst.msk [vmem:[#allocation7 + $0x8] sm:$0xff] %vm143_vm2, %v477_v47 }
 0x420   :  { %v554_v48 = vpop.f32.mrf.mxu1 }
 0x421   :  { %623 = shalt.err (!%p620_p0)
}
 0x422   :  { %494 = dma.vmem_to_hbm [thread:$0]  %s489_s26, 256, %s709_s3, [#allocation4], %s639_s15, %s639_s15, %s640_s16  }
 0x423   :  { %636 = dma.done.wait [#allocation4], 256  }
 0x424   :  { %637 = vsyncadd [#allocation4], 4294967040 }
 0x425   :  { %498 = vsyncpa [#allocation3], 1 }
 0x426   :  { %499 = vsyncpa [#allocation6], 1 }
 0x427   :  { %500 = vsyncpa [#allocation4], 1 }

</bundles_post_ra>
